<compile_context>
chip_gen: v6e
topology: v6e:2x2x1
jax: 0.10.0
libtpu: 0.0.40
codegen_flags: <defaults>
</compile_context>

<pallas_src>
import jax
import jax.numpy as jnp
from jax.experimental import pallas as pl
from jax.experimental.pallas import tpu as pltpu


def _round_up(a, b):
    return ((a + b - 1) // b) * b


def _vmem_capacity_bytes():
    """Physical VMEM per TensorCore; conservative fallback = 64 MiB (v7x)."""
    try:
        info = pltpu.get_tpu_info()
        cap = int(getattr(info, "vmem_capacity_bytes", 0) or 0)
        if cap > 0:
            return cap
    except Exception:
        pass
    return 64 * 1024 * 1024


def _proj_kernel(patches_ref, w_ref, b_ref, o_ref):
    # patches_ref: (tm, K)     bf16 VMEM (streamed, double-buffered)
    # w_ref      : (K, E_pad)  bf16 VMEM (resident, single-buffered)
    # b_ref      : (1, E_pad)  f32  VMEM (resident, single-buffered)
    # o_ref      : (tm, E_pad)      VMEM (lane-dense: E_pad % 128 == 0)
    acc = jnp.dot(patches_ref[...], w_ref[...],
                  preferred_element_type=jnp.float32)
    o_ref[...] = (acc + b_ref[...]).astype(o_ref.dtype)


def _proj_kernel_ktiled(patches_ref, w_ref, b_ref, o_ref, acc_ref):
    # K split over the innermost ("arbitrary") grid axis; f32 accumulator.
    k = pl.program_id(1)

    @pl.when(k == 0)
    def _():
        acc_ref[...] = jnp.zeros_like(acc_ref)

    acc_ref[...] += jnp.dot(patches_ref[...], w_ref[...],
                            preferred_element_type=jnp.float32)

    @pl.when(k == pl.num_programs(1) - 1)
    def _():
        o_ref[...] = (acc_ref[...] + b_ref[...]).astype(o_ref.dtype)


def patch_embed_3d(x, weight, bias, patch_size, *, tm_max=1024):
    """x: (B, 1, D, H, W).  weight: (E, 1, p, p, p).  bias: (E,).  -> (B, N, E)."""
    B, C, D, H, W = x.shape
    assert C == 1
    p = patch_size
    E = weight.shape[0]
    nd, nh, nw = D // p, H // p, W // p
    assert nd * p == D and nh * p == H and nw * p == W
    N = nd * nh * nw
    K = p * p * p
    M = B * N
    out_dtype = x.dtype

    # --- bf16 inputs (halves the dominant HBM streams, fast MXU path); the
    # matmul accumulates in f32 and the bias add stays f32 in-kernel.
    xb = x.astype(jnp.bfloat16)

    # --- im2col: non-overlapping patch extraction (pure layout work, left to
    # XLA with an allow_input_fusion hint so it can fuse into this call).
    xp = xb.reshape(B, nd, p, nh, p, nw, p)
    xp = jnp.transpose(xp, (0, 1, 3, 5, 2, 4, 6))        # (B, nd, nh, nw, p, p, p)
    patches = xp.reshape(M, K)                           # (M, K) bf16
    # TODO(synk): if HLO shows this transpose materializing, switch to manual
    # slab DMA (memory_space=pl.ANY) + in-VMEM relayout inside the kernel.

    # --- lane-dense projection operands: pad E up to a multiple of 128.
    E_pad = _round_up(E, 128)
    w_mat = weight.reshape(E, K).T.astype(jnp.bfloat16)  # (K, E)
    if E_pad != E:
        w_mat = jnp.pad(w_mat, ((0, 0), (0, E_pad - E)))
        b_vec = jnp.pad(bias, (0, E_pad - E))
    else:
        b_vec = bias
    b_mat = b_vec.astype(jnp.float32).reshape(1, E_pad)

    # --- generation-aware VMEM budget (v7x: 64 MiB/TC, v5e/v6e: 128 MiB).
    vmem_cap = _vmem_capacity_bytes()
    vmem_limit = int(min((vmem_cap * 3) // 4, 96 * 1024 * 1024))
    budget = vmem_limit - 2 * 1024 * 1024                # headroom for Mosaic scratch

    # --- K tile: keep the whole weight resident unless even a single buffer
    # would eat > ~1/3 of the budget (huge E on v7x); then K-tile it.
    tk = K
    if K * E_pad * 2 > budget // 3:
        t = (K // 128) * 128
        while t >= 128:
            if K % t == 0 and 2 * t * E_pad * 2 <= budget // 3:
                tk = t
                break
            t -= 128
    num_k = K // tk

    def _vmem_usage(tm):
        patches_b = 2 * tm * tk * 2                       # double-buffered bf16
        w_b = (1 if num_k == 1 else 2) * tk * E_pad * 2   # bf16, 1 buf if resident
        bias_b = E_pad * 4
        out_b = 2 * tm * E_pad * 4                        # double-buffered f32
        acc_b = tm * E_pad * 4 if num_k > 1 else 0
        return patches_b + w_b + bias_b + out_b + acc_b

    # --- largest row tile that fits the budget (multiple of 128 when possible,
    # always a multiple of 16 for bf16 sublane packing).
    if M >= 128:
        tm = min(tm_max, _round_up(M, 128))
    else:
        tm = max(16, _round_up(M, 16))
    while tm > 16 and _vmem_usage(tm) > budget:
        tm = max(16, _round_up(tm // 2, 16))

    grid_m = pl.cdiv(M, tm)      # ragged M tail masked by Pallas: no jnp.pad,
                                 # no post-kernel out[:M] slice copy.
    resident = pl.Buffered(1)    # weight/bias have constant index_maps.

    if num_k == 1:
        kernel = _proj_kernel
        grid = (grid_m,)
        in_specs = [
            pl.BlockSpec((tm, K), lambda i: (i, 0)),
            pl.BlockSpec((K, E_pad), lambda i: (0, 0), pipeline_mode=resident),
            pl.BlockSpec((1, E_pad), lambda i: (0, 0), pipeline_mode=resident),
        ]
        out_specs = pl.BlockSpec((tm, E_pad), lambda i: (i, 0))
        scratch_shapes = ()
        dim_sem = ("parallel",)
    else:
        kernel = _proj_kernel_ktiled
        grid = (grid_m, num_k)
        in_specs = [
            pl.BlockSpec((tm, tk), lambda i, k: (i, k)),
            pl.BlockSpec((tk, E_pad), lambda i, k: (k, 0)),
            pl.BlockSpec((1, E_pad), lambda i, k: (0, 0), pipeline_mode=resident),
        ]
        out_specs = pl.BlockSpec((tm, E_pad), lambda i, k: (i, 0))
        scratch_shapes = (pltpu.VMEM((tm, E_pad), jnp.float32),)
        dim_sem = ("parallel", "arbitrary")

    out = pl.pallas_call(
        kernel,
        out_shape=jax.ShapeDtypeStruct((M, E_pad), out_dtype),
        grid_spec=pltpu.PrefetchScalarGridSpec(
            num_scalar_prefetch=0,
            grid=grid,
            in_specs=in_specs,
            out_specs=out_specs,
            scratch_shapes=scratch_shapes,
        ),
        compiler_params=pltpu.CompilerParams(
            dimension_semantics=dim_sem,
            vmem_limit_bytes=vmem_limit,
            # Hint: allow XLA to fuse the im2col transpose into the patches
            # operand instead of materializing it separately in HBM.
            allow_input_fusion=[True, False, False],
        ),
    )(patches, w_mat, b_mat)

    if E_pad != E:               # only non-lane-aligned embed dims pay a slice
        out = out[:, :E]
    return out.reshape(B, N, E)


if __name__ == "__main__":
    key = jax.random.PRNGKey(0)
    k_x, k_w, k_b = jax.random.split(key, 3)

    # Small shapes consistent with the module: single-channel 3D volume.
    B, D, H, W = 2, 16, 16, 16
    patch_size = 4
    embed_dim = 32
    patch_vol = patch_size ** 3

    x = jax.random.normal(k_x, (B, 1, D, H, W), dtype=jnp.float32)

    # Deterministic Conv3d-style init (uniform in +/- 1/sqrt(fan_in)).
    bound = 1.0 / (patch_vol ** 0.5)
    weight = jax.random.uniform(
        k_w, (embed_dim, 1, patch_size, patch_size, patch_size),
        minval=-bound, maxval=bound, dtype=jnp.float32)
    bias = jax.random.uniform(
        k_b, (embed_dim,), minval=-bound, maxval=bound, dtype=jnp.float32)

    out = patch_embed_3d(x, weight, bias, patch_size)
    jax.block_until_ready(out)

    # Reference: lax 3D conv on the same bf16-rounded operands (the kernel runs
    # the projection in bf16 with f32 accumulation; bias stays f32).
    x_r = x.astype(jnp.bfloat16).astype(jnp.float32)
    w_r = weight.astype(jnp.bfloat16).astype(jnp.float32)
    ref = jax.lax.conv_general_dilated(
        x_r, w_r, window_strides=(patch_size,) * 3, padding="VALID",
        dimension_numbers=("NCDHW", "OIDHW", "NCDHW"),
        precision=jax.lax.Precision.HIGHEST)
    ref = ref + bias.reshape(1, embed_dim, 1, 1, 1)
    ref = ref.reshape(B, embed_dim, -1).transpose(0, 2, 1)

    n_patches = (D // patch_size) * (H // patch_size) * (W // patch_size)
    assert out.shape == (B, n_patches, embed_dim)
    assert float(jnp.max(jnp.abs(out - ref))) < 2e-3

    print("KERNEL_OK")
</pallas_src>

<mosaic_0001>
module attributes {stable_mosaic.version = 11 : i64} {
  func.func @_proj_kernel(%arg0: i32, %arg1: memref<128x64xbf16, #tpu.memory_space<vmem>>, %arg2: memref<64x128xbf16, #tpu.memory_space<vmem>>, %arg3: memref<1x128xf32, #tpu.memory_space<vmem>>, %arg4: memref<128x128xf32, #tpu.memory_space<vmem>>) attributes {dimension_semantics = [#tpu.dimension_semantics<parallel>], iteration_bounds = array<i64: 1>, scalar_prefetch = 0 : i64, scratch_operands = 0 : i64, tpu.core_type = #tpu.core_type<tc>, window_params = [{transform_indices = @transform_0, window_bounds = array<i64: 128, 64>}, {pipeline_mode = #tpu.pipeline_mode<synchronous>, transform_indices = @transform_1, window_bounds = array<i64: 64, 128>}, {pipeline_mode = #tpu.pipeline_mode<synchronous>, transform_indices = @transform_2, window_bounds = array<i64: 1, 128>}, {transform_indices = @transform_3, window_bounds = array<i64: 128, 128>}]} {
    %c0 = arith.constant 0 : index
    %c0_0 = arith.constant 0 : index
    %0 = vector.load %arg1[%c0, %c0_0] : memref<128x64xbf16, #tpu.memory_space<vmem>>, vector<128x64xbf16>
    %c0_1 = arith.constant 0 : index
    %c0_2 = arith.constant 0 : index
    %1 = vector.load %arg2[%c0_1, %c0_2] : memref<64x128xbf16, #tpu.memory_space<vmem>>, vector<64x128xbf16>
    %cst = arith.constant dense<0.000000e+00> : vector<128x128xf32>
    %2 = tpu.matmul %0, %1, %cst {dimension_numbers = #tpu.dot_dimension_numbers<[1], [0], [0], [1], [0, 0, 1, 1], [], []>} : vector<128x64xbf16>, vector<64x128xbf16>, vector<128x128xf32> -> vector<128x128xf32>
    %c0_3 = arith.constant 0 : index
    %c0_4 = arith.constant 0 : index
    %3 = vector.load %arg3[%c0_3, %c0_4] : memref<1x128xf32, #tpu.memory_space<vmem>>, vector<1x128xf32>
    %4 = vector.broadcast %3 : vector<1x128xf32> to vector<128x128xf32>
    %5 = arith.addf %2, %4 : vector<128x128xf32>
    %c0_5 = arith.constant 0 : index
    %c0_6 = arith.constant 0 : index
    %6 = vector.load %arg4[%c0_5, %c0_6] : memref<128x128xf32, #tpu.memory_space<vmem>>, vector<128x128xf32>
    tpu.vector_store %arg4[%c0_5, %c0_6], %5 {strides = array<i32>} : memref<128x128xf32, #tpu.memory_space<vmem>>, vector<128x128xf32>,
    return
  }
  func.func @transform_0(%arg0: i32) -> (i32, i32) {
    %c0_i32 = arith.constant 0 : i32
    %c0_i32_0 = arith.constant 0 : i32
    return %arg0, %c0_i32 : i32, i32
  }
  func.func @transform_1(%arg0: i32) -> (i32, i32) {
    %c0_i32 = arith.constant 0 : i32
    %c0_i32_0 = arith.constant 0 : i32
    %c0_i32_1 = arith.constant 0 : i32
    return %c0_i32, %c0_i32_0 : i32, i32
  }
  func.func @transform_2(%arg0: i32) -> (i32, i32) {
    %c0_i32 = arith.constant 0 : i32
    %c0_i32_0 = arith.constant 0 : i32
    %c0_i32_1 = arith.constant 0 : i32
    return %c0_i32, %c0_i32_0 : i32, i32
  }
  func.func @transform_3(%arg0: i32) -> (i32, i32) {
    %c0_i32 = arith.constant 0 : i32
    %c0_i32_0 = arith.constant 0 : i32
    return %arg0, %c0_i32 : i32, i32
  }
}

</mosaic_0001>

<bundles_post_ra>
// kernel: tpu_custom_call.1
= control target key start
LH: loop header
LB: loop body
LE: loop exit
PB: predicated region body
PF: predicated region fallthrough
CT: control target
= control target key end

     0   :  { %vm111_vm0 = vcmask 523264   ;;  %s440_s0 = inlined_call_operand.vmem [shape: bf16[128,64], index: 0, kind: input, shape index: {}]   ;;  %s441_s1 = inlined_call_operand.vmem [shape: bf16[64,128], index: 1, kind: input, shape index: {}]   ;;  %s442_s2 = inlined_call_operand.vmem [shape: f32[1,128], index: 2, kind: input, shape index: {}]   ;;  %s443_s3 = inlined_call_operand.hbm [shape: f32[128,128], index: 3, kind: output, shape index: {}]  }
   0x1   :  { %v333_v0 = vld [vmem:[%s441_s1 + $0x18] sm:$0xff]   ;;  %v334_v1 = vld [vmem:[%s441_s1 + $0x10] sm:$0xff]   ;;  %v335_v2 = vld [vmem:[%s441_s1 + $0x8] sm:$0xff]  }
   0x2   :  { %298 = vmatprep.subr.bf16.mxu0 %v333_v0  ;;  %322 = vmatprep.subr.bf16.mxu1 %v333_v0  ;;  %v337_v3 = vld [vmem:[%s440_s0] sm:$0xff]  }
   0x3   :  { %299 = vmatpush3.bf16.msra.mxu0 %v333_v0  ;;  %326 = vmatpush3.bf16.msra.mxu1 %v333_v0  ;;  %v338_v4 = vld [vmem:[%s440_s0 + $0x20] sm:$0xff]  }
   0x4   :  { %300 = vmatprep.subr.bf16.mxu0 %v334_v1  ;;  %323 = vmatprep.subr.bf16.mxu1 %v334_v1  ;;  %v336_v5 = vld [vmem:[%s441_s1] sm:$0xff]  }
   0x5   :  { %306 = vmatprep.mubr.msk.bf16.mxu0 %vm111_vm0, %v337_v3  ;;  %314 = vmatprep.mubr.msk.bf16.mxu1 %vm111_vm0, %v338_v4 }
   0x7   :  { %301 = vmatpush3.bf16.msra.mxu0 %v334_v1  ;;  %327 = vmatpush3.bf16.msra.mxu1 %v334_v1 }
   0x8   :  { %302 = vmatprep.subr.bf16.mxu0 %v335_v2  ;;  %324 = vmatprep.subr.bf16.mxu1 %v335_v2 }
   0xb   :  { %303 = vmatpush3.bf16.msra.mxu0 %v335_v2  ;;  %328 = vmatpush3.bf16.msra.mxu1 %v335_v2 }
   0xc   :  { %304 = vmatprep.subr.bf16.mxu0 %v336_v5  ;;  %325 = vmatprep.subr.bf16.mxu1 %v336_v5 }
   0xd   :  { %8 = vsyncpa [#allocation3], 0  ;;  %v339_v6 = vld [vmem:[%s440_s0 + $0x8] sm:$0xff]   ;;  %v341_v8 = vld [vmem:[%s440_s0 + $0x10] sm:$0xff]  }
   0xe   :  { %v340_v7 = vld [vmem:[%s440_s0 + $0x28] sm:$0xff]   ;;  %v342_v9 = vld [vmem:[%s440_s0 + $0x30] sm:$0xff]   ;;  %v343_v10 = vld [vmem:[%s440_s0 + $0x18] sm:$0xff]  }
   0xf   :  { %305 = vmatpush3.bf16.msra.mxu0 %v336_v5  ;;  %329 = vmatpush3.bf16.msra.mxu1 %v336_v5  ;;  %v344_v11 = vld [vmem:[%s440_s0 + $0x38] sm:$0xff]   ;;  %v265_v12 = vld [vmem:[%s442_s2] ss:$0 sm:$0xff]  ;;  %s367_s0 = smov [#allocation2]  }
  0x10   :  { %s254_s2 = sshll.u32 %s367_s0, 4  ;;  %s255_s2 = int_to_ptr.vmem [resolvable:$true] %s254_s2 }
  0x11   :  { %s345_s10 = scalar_lea.vmem %s255_s2, 2048  ;;  %p350_p1 = scmp.lt.s32.totalorder %s255_s2, %s255_s2 }
  0x12   :  { %307 = vmatmul.mubr.msk.bf16.vlgmr.msra.gmra.mxu0 %vm111_vm0, %v339_v6  ;;  %315 = vmatmul.mubr.msk.bf16.vlgmr.msra.gmra.mxu1 %vm111_vm0, %v340_v7  ;;  %p346_p0 = scmp.ne.s32.totalorder %s255_s2, %s345_s10  ;;  %p351_p2 = scmp.lt.s32.totalorder %s345_s10, %s345_s10 }
  0x13   :  { %310 = vmatprep.mubr.msk.bf16.mxu0 %vm111_vm0, %v341_v8  ;;  %318 = vmatprep.mubr.msk.bf16.mxu1 %vm111_vm0, %v342_v9 }
  0x14   :  { %p352_p3 = por %p351_p2, %p350_p1 }
  0x16   :  { %p353_p4 = pnand %p352_p3, %p346_p0 }
  0x1a   :  { %311 = vmatmul.mubr.msk.bf16.gmra.mxu0 %vm111_vm0, %v343_v10  ;;  %319 = vmatmul.mubr.msk.bf16.gmra.mxu1 %vm111_vm0, %v344_v11 }
  0xd2   :  { %v308_v13 = vpop.f32.mrf.mxu0  ;;  %v316_v14 = vpop.f32.mrf.mxu1 }
  0xd3   :  { %v179_v15 = vadd.f32 %v308_v13, %v265_v12  ;;  %v211_v16 = vadd.f32 %v316_v14, %v265_v12 }
  0xd4   :  { %v170_v17 = vpop.f32.mrf.mxu0  ;;  %v202_v18 = vpop.f32.mrf.mxu1 }
  0xd5   :  { %235 = vst [vmem:[#allocation2 + $0x10] sm:$0xff] %v179_v15  ;;  %243 = vst [vmem:[#allocation2 + $0x50] sm:$0xff] %v211_v16  ;;  %v171_v19 = vadd.f32 %v265_v12, %v170_v17  ;;  %v203_v20 = vadd.f32 %v265_v12, %v202_v18 }
  0xd6   :  { %v309_v21 = vpop.f32.mrf.mxu0  ;;  %v317_v22 = vpop.f32.mrf.mxu1 }
  0xd7   :  { %233 = vst [vmem:[#allocation2] sm:$0xff] %v171_v19  ;;  %241 = vst [vmem:[#allocation2 + $0x40] sm:$0xff] %v203_v20  ;;  %v182_v23 = vadd.f32 %v309_v21, %v265_v12  ;;  %v214_v24 = vadd.f32 %v317_v22, %v265_v12 }
  0xd8   :  { %v173_v25 = vpop.f32.mrf.mxu0  ;;  %v205_v26 = vpop.f32.mrf.mxu1 }
  0xd9   :  { %236 = vst [vmem:[#allocation2 + $0x18] sm:$0xff] %v182_v23  ;;  %244 = vst [vmem:[#allocation2 + $0x58] sm:$0xff] %v214_v24  ;;  %v174_v27 = vadd.f32 %v265_v12, %v173_v25  ;;  %v206_v28 = vadd.f32 %v265_v12, %v205_v26 }
  0xda   :  { %v312_v29 = vpop.f32.mrf.mxu0  ;;  %v320_v30 = vpop.f32.mrf.mxu1 }
  0xdb   :  { %234 = vst [vmem:[#allocation2 + $0x8] sm:$0xff] %v174_v27  ;;  %242 = vst [vmem:[#allocation2 + $0x48] sm:$0xff] %v206_v28  ;;  %v195_v31 = vadd.f32 %v312_v29, %v265_v12  ;;  %v227_v32 = vadd.f32 %v320_v30, %v265_v12 }
  0xdc   :  { %v186_v33 = vpop.f32.mrf.mxu0  ;;  %v218_v34 = vpop.f32.mrf.mxu1 }
  0xdd   :  { %239 = vst [vmem:[#allocation2 + $0x30] sm:$0xff] %v195_v31  ;;  %247 = vst [vmem:[#allocation2 + $0x70] sm:$0xff] %v227_v32  ;;  %v187_v35 = vadd.f32 %v265_v12, %v186_v33  ;;  %v219_v36 = vadd.f32 %v265_v12, %v218_v34 }
  0xde   :  { %v313_v37 = vpop.f32.mrf.mxu0  ;;  %v321_v38 = vpop.f32.mrf.mxu1 }
  0xdf   :  { %237 = vst [vmem:[#allocation2 + $0x20] sm:$0xff] %v187_v35  ;;  %245 = vst [vmem:[#allocation2 + $0x60] sm:$0xff] %v219_v36  ;;  %v198_v39 = vadd.f32 %v313_v37, %v265_v12  ;;  %v230_v40 = vadd.f32 %v321_v38, %v265_v12 }
  0xe0   :  { %v189_v41 = vpop.f32.mrf.mxu0  ;;  %v221_v42 = vpop.f32.mrf.mxu1 }
  0xe1   :  { %240 = vst [vmem:[#allocation2 + $0x38] sm:$0xff] %v198_v39  ;;  %248 = vst [vmem:[#allocation2 + $0x78] sm:$0xff] %v230_v40  ;;  %v190_v43 = vadd.f32 %v265_v12, %v189_v41  ;;  %v222_v44 = vadd.f32 %v265_v12, %v221_v42 }
  0xe3   :  { %238 = vst [vmem:[#allocation2 + $0x28] sm:$0xff] %v190_v43  ;;  %246 = vst [vmem:[#allocation2 + $0x68] sm:$0xff] %v222_v44 }
  0xe4   :  { %356 = shalt.err (!%p353_p4)
}
  0xe5   :  { %s368_s11 = smov 128   ;;  %s369_s12 = smov 8  }
  0xe6   :  { %260 = dma.vmem_to_hbm [thread:$0]  %s255_s2, 2048, %s443_s3, [#allocation3], %s368_s11, %s368_s11, %s369_s12  }
  0xe7   :  { %365 = dma.done.wait [#allocation3], 2048  }
  0xe8   :  { %366 = vsyncadd [#allocation3], 4294965248 }
  0xe9   :  { %264 = vsyncpa [#allocation3], 1 }

</bundles_post_ra>
